<compile_context>
chip_gen: v6e
topology: v6e:2x2x1
jax: 0.10.0
libtpu: 0.0.40
codegen_flags: <defaults>
</compile_context>

<pallas_src>
import functools

import jax
import jax.numpy as jnp
from jax.experimental import pallas as pl
from jax.experimental.pallas import tpu as pltpu


# ----------------------------------------------------------------------------
# Pallas kernel: attention scores for the whole batch in one invocation.
#
#   scores[b, o] = mean_t( relu( <normalize(Wq @ other[b,o]),
#                                 normalize(Wk @ target[b,t])> ) )
#
# Layout: other tokens arrive natural (B*O, D); the q projection is produced
# lane-dense as (H, B*O) via an in-kernel NT dot_general. One fused
# (B*T, H) @ (H, B*O) similarity matmul, then per-batch diagonal-block
# sublane sums with direct per-row (1, O) stores.
# ----------------------------------------------------------------------------
def _score_kernel(oth_ref, tgt_ref, wq_ref, bq_ref, wk_ref, bk_ref, out_ref,
                  *, batch, n_other, n_target):
    # q projection, lane-dense result: (H, D) x (B*O, D) contracted over D
    # -> (H, B*O).  The transposed RHS is handled inside the kernel (XLU).
    qT = jax.lax.dot_general(
        wq_ref[...], oth_ref[...],
        dimension_numbers=(((1,), (1,)), ((), ())),
        preferred_element_type=jnp.float32)
    qT = qT + bq_ref[...]                                     # (H, 1) bcast over lanes

    # k projection, natural: (B*T, D) @ (D, H) -> (B*T, H).
    k = jnp.dot(tgt_ref[...], wk_ref[...], preferred_element_type=jnp.float32)
    k = k + bk_ref[...]                                       # (1, H) bcast over sublanes

    # L2 normalize over the feature axis (axis 0 for qT, axis -1 for k).
    # NOTE: uses rsqrt(sum + eps); diverges from the reference only for
    # exactly-zero-norm rows (kernel -> 0, reference -> NaN).
    eps = 1e-12
    qnT = qT * jax.lax.rsqrt(jnp.sum(qT * qT, axis=0, keepdims=True) + eps)
    kn = k * jax.lax.rsqrt(jnp.sum(k * k, axis=-1, keepdims=True) + eps)

    # Single fused similarity matmul: (B*T, H) @ (H, B*O) -> (B*T, B*O).
    # Only the B diagonal (T, O) blocks are useful; off-diagonal work is
    # cheaper than paying MXU fill/drain per batch.
    simsT = jnp.dot(kn, qnT, preferred_element_type=jnp.float32)

    inv_t = 1.0 / n_target
    for b in range(batch):                                    # static, tiny (B=2)
        blk = simsT[b * n_target:(b + 1) * n_target,
                    b * n_other:(b + 1) * n_other]            # (T, O) tile-aligned slice
        blk = jnp.maximum(blk, 0.0)                           # ReLU
        # mean over target tokens folded into a single 1/T multiply;
        # direct per-row lane-dense store (no concat).
        out_ref[b:b + 1, :] = jnp.sum(blk, axis=0, keepdims=True) * inv_t


def _compute_scores(oth_flat, tgt_flat, wq_pad, bq_col, wk_pad, bk_row,
                    *, batch, n_other, n_target):
    BO, D = oth_flat.shape       # (B*O, D)
    BT, _ = tgt_flat.shape       # (B*T, D)
    H = wq_pad.shape[0]

    flops = (2 * H * D * BO                       # q projection
             + 2 * BT * D * H                     # k projection
             + 2 * BT * H * BO)                   # fused similarity matmul
    bytes_accessed = 4 * (oth_flat.size + tgt_flat.size + wq_pad.size
                          + bq_col.size + wk_pad.size + bk_row.size
                          + batch * n_other)

    kernel = functools.partial(_score_kernel, batch=batch,
                               n_other=n_other, n_target=n_target)

    scores = pl.pallas_call(
        kernel,
        out_shape=jax.ShapeDtypeStruct((batch, n_other), jnp.float32),
        grid_spec=pltpu.PrefetchScalarGridSpec(
            num_scalar_prefetch=0,
            grid=(1,),                                   # whole batch, one invocation
            in_specs=[
                pl.BlockSpec((BO, D), lambda i: (0, 0)),    # other tokens, natural layout
                pl.BlockSpec((BT, D), lambda i: (0, 0)),    # target tokens, flattened
                pl.BlockSpec((H, D), lambda i: (0, 0)),     # wq (padded, torch layout)
                pl.BlockSpec((H, 1), lambda i: (0, 0)),     # bq column
                pl.BlockSpec((D, H), lambda i: (0, 0)),     # wk (padded, (in,out) layout)
                pl.BlockSpec((1, H), lambda i: (0, 0)),     # bk row
            ],
            out_specs=pl.BlockSpec((batch, n_other), lambda i: (0, 0)),
        ),
        compiler_params=pltpu.CompilerParams(
            dimension_semantics=("arbitrary",)),
        cost_estimate=pl.CostEstimate(flops=int(flops),
                                      transcendentals=int(BO + BT),
                                      bytes_accessed=int(bytes_accessed)),
    )(oth_flat, tgt_flat, wq_pad, bq_col, wk_pad, bk_row)
    return scores


# ----------------------------------------------------------------------------
# One-time parameter preparation (hoisted out of the forward pass).
# The Linear layers act on the LAST Dh features; zero-padding the weights to
# full D lets the kernel consume natural full-D token blocks with no
# per-call strided slice / concat / transpose of the weights.
# ----------------------------------------------------------------------------
def prepare_score_params(params, input_dim):
    wq_t, bq, wk_t, bk = params           # torch layout: (H, Dh), (H,), (H, Dh), (H,)
    D = input_dim
    Dh = D // 2
    H = wq_t.shape[0]
    wq_pad = jnp.concatenate([jnp.zeros((H, D - Dh), wq_t.dtype), wq_t], axis=1)    # (H, D)
    bq_col = bq.reshape(H, 1)
    wk_pad = jnp.concatenate([jnp.zeros((D - Dh, H), wk_t.dtype), wk_t.T], axis=0)  # (D, H)
    bk_row = bk.reshape(1, H)
    return wq_pad, bq_col, wk_pad, bk_row


# ----------------------------------------------------------------------------
# Score path wrapper: flattens the token blocks (natural layout, no transpose)
# and calls the Pallas kernel.
# ----------------------------------------------------------------------------
def compute_attention_scores(x, num_target_tokens, score_params):
    wq_pad, bq_col, wk_pad, bk_row = score_params
    B, L, D = x.shape
    T = num_target_tokens
    O = L - T

    oth_flat = x[:, :O, :].reshape(B * O, D)
    tgt_flat = x[:, O:, :].reshape(B * T, D)

    return _compute_scores(oth_flat, tgt_flat, wq_pad, bq_col, wk_pad, bk_row,
                           batch=B, n_other=O, n_target=T)     # (B, O)


# ----------------------------------------------------------------------------
# Full forward pass (matches the PyTorch module semantics).
# ----------------------------------------------------------------------------
def token_fusion_forward(x, num_target_tokens, score_params, *,
                         fusion_ratio=0.25, init_reduce_rate=4, limit=512):
    B, L, D = x.shape
    T = num_target_tokens
    O = L - T

    target_tokens = x[:, O:, :]
    other_tokens = x[:, :O, :]

    # --- hot path in Pallas ---
    attention_scores = compute_attention_scores(x, T, score_params)      # (B, O)

    # --- data-dependent fusion (plain JAX glue) ---
    # TODO(synk): sort / gather / grouped softmax fusion kept in plain JAX —
    # data-dependent, shape-changing control flow has no clean Pallas equivalent
    # at these tiny sizes (this glue dominates wall clock; profile before more
    # kernel tuning).
    token_ids = jnp.broadcast_to(jnp.arange(O, dtype=jnp.int32), (B, O))
    neg_sorted, sorted_indices = jax.lax.sort_key_val(
        -attention_scores, token_ids, dimension=1)                       # one fused sort
    sorted_scores = -neg_sorted                                          # descending

    num_keep = int(O * fusion_ratio)
    top_indices = sorted_indices[:, :num_keep]
    top_tokens = jnp.take_along_axis(other_tokens, top_indices[:, :, None], axis=1)
    top_scores = jnp.take_along_axis(attention_scores, top_indices, axis=1)
    fused_tokens = [top_tokens * top_scores[:, :, None]]

    remaining_indices = sorted_indices[:, num_keep:]
    remaining = limit - num_keep
    fusion_step = init_reduce_rate
    while remaining > 0 and fusion_step <= remaining:
        num_to_fuse = max(int(remaining * fusion_ratio), fusion_step)
        num_groups = num_to_fuse // fusion_step

        idx = remaining_indices[:, : num_groups * fusion_step]           # (B, G*fs)
        slice_tokens = jnp.take_along_axis(
            other_tokens, idx[:, :, None], axis=1
        ).reshape(B, num_groups, fusion_step, D)
        # NOTE: reproduces the original module exactly: sorted_scores is gathered
        # with the *token-id values* stored in remaining_indices (not by rank).
        slice_scores = jnp.take_along_axis(
            sorted_scores, idx, axis=1
        ).reshape(B, num_groups, fusion_step)

        weights = jax.nn.softmax(slice_scores, axis=-1)                  # per-group softmax
        group_tokens = jnp.sum(slice_tokens * weights[..., None], axis=2)
        group_scores = jnp.sum(slice_scores * weights, axis=2)

        fused_tokens.append(group_tokens * group_scores[:, :, None])
        remaining_indices = remaining_indices[:, num_to_fuse:]
        remaining -= num_to_fuse
        fusion_step *= init_reduce_rate

    output_tokens = jnp.concatenate(fused_tokens, axis=1)[:, :limit, :]
    output_tokens = jnp.concatenate([output_tokens[:, ::-1, :], target_tokens], axis=1)
    return output_tokens


# ----------------------------------------------------------------------------
# Pure-JAX reference for the score path (correctness check only).
# ----------------------------------------------------------------------------
def _reference_scores(x, num_target_tokens, params):
    wq_t, bq, wk_t, bk = params
    B, L, D = x.shape
    T = num_target_tokens
    O = L - T
    Dh = D // 2
    hp = jax.lax.Precision.HIGHEST
    other_half = x[:, :O, D - Dh:]
    target_half = x[:, O:, D - Dh:]
    q = jnp.einsum('bod,hd->boh', other_half, wq_t, precision=hp) + bq
    k = jnp.einsum('btd,hd->bth', target_half, wk_t, precision=hp) + bk
    qn = q / jnp.sqrt(jnp.sum(q * q, axis=-1, keepdims=True))
    kn = k / jnp.sqrt(jnp.sum(k * k, axis=-1, keepdims=True))
    sims = jnp.einsum('boh,bth->bto', qn, kn, precision=hp)
    return jnp.maximum(sims, 0.0).mean(axis=1)


# ----------------------------------------------------------------------------
# Deterministic parameter init (torch nn.Linear layout: weight (out, in)).
# ----------------------------------------------------------------------------
def init_params(key, input_dim, hidden=32):
    din = input_dim // 2
    k1, k2, k3, k4 = jax.random.split(key, 4)
    s = 1.0 / (din ** 0.5)
    wq = jax.random.uniform(k1, (hidden, din), jnp.float32, -s, s)
    bq = jax.random.uniform(k2, (hidden,), jnp.float32, -s, s)
    wk = jax.random.uniform(k3, (hidden, din), jnp.float32, -s, s)
    bk = jax.random.uniform(k4, (hidden,), jnp.float32, -s, s)
    return wq, bq, wk, bk


if __name__ == "__main__":
    # Small, static configuration consistent with the module:
    #   input_dim D = 32, batch B = 2, seq L = 136,
    #   num_target_tokens T = 8  -> other tokens O = 128, limit = 64.
    B, L, D = 2, 136, 32
    T = 8
    LIMIT = 64

    key = jax.random.PRNGKey(0)
    kx, kp = jax.random.split(key)
    x = jax.random.normal(kx, (B, L, D), dtype=jnp.float32)
    params = init_params(kp, D)

    # One-time weight preparation (hoisted out of the per-call path).
    score_params = prepare_score_params(params, D)
    score_params = jax.tree_util.tree_map(jnp.asarray, score_params)

    # Correctness check of the Pallas score path vs a pure-JAX reference.
    kernel_scores = compute_attention_scores(x, T, score_params)
    ref_scores = _reference_scores(x, T, params)
    jax.block_until_ready(kernel_scores)
    assert bool(jnp.allclose(kernel_scores, ref_scores, rtol=1e-3, atol=1e-3)), \
        "Pallas score kernel mismatch vs reference"

    fwd = jax.jit(functools.partial(
        token_fusion_forward,
        num_target_tokens=T,
        score_params=score_params,
        fusion_ratio=0.25,
        init_reduce_rate=4,
        limit=LIMIT,
    ))

    out = fwd(x)
    jax.block_until_ready(out)

    # Sanity: output = fused tokens (<= limit) followed by the target tokens.
    assert out.shape[0] == B and out.shape[2] == D
    assert bool(jnp.all(jnp.isfinite(out)))
    print("KERNEL_OK")
</pallas_src>

<mosaic_0001>
module attributes {stable_mosaic.version = 11 : i64} {
  func.func @_score_kernel(%arg0: i32, %arg1: memref<256x32xf32, #tpu.memory_space<vmem>>, %arg2: memref<16x32xf32, #tpu.memory_space<vmem>>, %arg3: memref<32x32xf32, #tpu.memory_space<vmem>>, %arg4: memref<32x1xf32, #tpu.memory_space<vmem>>, %arg5: memref<32x32xf32, #tpu.memory_space<vmem>>, %arg6: memref<1x32xf32, #tpu.memory_space<vmem>>, %arg7: memref<2x128xf32, #tpu.memory_space<vmem>>) attributes {dimension_semantics = [#tpu.dimension_semantics<arbitrary>], iteration_bounds = array<i64: 1>, scalar_prefetch = 0 : i64, scratch_operands = 0 : i64, tpu.core_type = #tpu.core_type<tc>, window_params = [{pipeline_mode = #tpu.pipeline_mode<synchronous>, transform_indices = @transform_0, window_bounds = array<i64: 256, 32>}, {pipeline_mode = #tpu.pipeline_mode<synchronous>, transform_indices = @transform_1, window_bounds = array<i64: 16, 32>}, {pipeline_mode = #tpu.pipeline_mode<synchronous>, transform_indices = @transform_2, window_bounds = array<i64: 32, 32>}, {pipeline_mode = #tpu.pipeline_mode<synchronous>, transform_indices = @transform_3, window_bounds = array<i64: 32, 1>}, {pipeline_mode = #tpu.pipeline_mode<synchronous>, transform_indices = @transform_4, window_bounds = array<i64: 32, 32>}, {pipeline_mode = #tpu.pipeline_mode<synchronous>, transform_indices = @transform_5, window_bounds = array<i64: 1, 32>}, {pipeline_mode = #tpu.pipeline_mode<synchronous>, transform_indices = @transform_6, window_bounds = array<i64: 2, 128>}]} {
    %c0 = arith.constant 0 : index
    %c0_0 = arith.constant 0 : index
    %0 = vector.load %arg3[%c0, %c0_0] : memref<32x32xf32, #tpu.memory_space<vmem>>, vector<32x32xf32>
    %c0_1 = arith.constant 0 : index
    %c0_2 = arith.constant 0 : index
    %1 = vector.load %arg1[%c0_1, %c0_2] : memref<256x32xf32, #tpu.memory_space<vmem>>, vector<256x32xf32>
    %cst = arith.constant dense<0.000000e+00> : vector<32x256xf32>
    %2 = tpu.matmul %0, %1, %cst {dimension_numbers = #tpu.dot_dimension_numbers<[1], [1], [0], [0], [0, 0, 1, 0], [], []>} : vector<32x32xf32>, vector<256x32xf32>, vector<32x256xf32> -> vector<32x256xf32>
    %c0_3 = arith.constant 0 : index
    %c0_4 = arith.constant 0 : index
    %3 = vector.load %arg4[%c0_3, %c0_4] : memref<32x1xf32, #tpu.memory_space<vmem>>, vector<32x1xf32>
    %4 = vector.broadcast %3 : vector<32x1xf32> to vector<32x256xf32>
    %5 = arith.addf %2, %4 : vector<32x256xf32>
    %c0_5 = arith.constant 0 : index
    %c0_6 = arith.constant 0 : index
    %6 = vector.load %arg2[%c0_5, %c0_6] : memref<16x32xf32, #tpu.memory_space<vmem>>, vector<16x32xf32>
    %c0_7 = arith.constant 0 : index
    %c0_8 = arith.constant 0 : index
    %7 = vector.load %arg5[%c0_7, %c0_8] : memref<32x32xf32, #tpu.memory_space<vmem>>, vector<32x32xf32>
    %cst_9 = arith.constant dense<0.000000e+00> : vector<16x32xf32>
    %8 = tpu.matmul %6, %7, %cst_9 {dimension_numbers = #tpu.dot_dimension_numbers<[1], [0], [0], [1], [0, 0, 1, 1], [], []>} : vector<16x32xf32>, vector<32x32xf32>, vector<16x32xf32> -> vector<16x32xf32>
    %c0_10 = arith.constant 0 : index
    %c0_11 = arith.constant 0 : index
    %9 = vector.load %arg6[%c0_10, %c0_11] : memref<1x32xf32, #tpu.memory_space<vmem>>, vector<1x32xf32>
    %10 = vector.broadcast %9 : vector<1x32xf32> to vector<16x32xf32>
    %11 = arith.addf %8, %10 : vector<16x32xf32>
    %12 = arith.mulf %5, %5 : vector<32x256xf32>
    %cst_12 = arith.constant dense<0.000000e+00> : vector<256xf32>
    %13 = vector.multi_reduction <add>, %12, %cst_12 [0] : vector<32x256xf32> to vector<256xf32>
    %14 = vector.shape_cast %13 : vector<256xf32> to vector<1x256xf32>
    %cst_13 = arith.constant 9.99999996E-13 : f32
    %15 = vector.broadcast %cst_13 : f32 to vector<1x256xf32>
    %16 = arith.addf %14, %15 : vector<1x256xf32>
    %17 = math.rsqrt %16 : vector<1x256xf32>
    %18 = vector.broadcast %17 : vector<1x256xf32> to vector<32x256xf32>
    %19 = arith.mulf %5, %18 : vector<32x256xf32>
    %20 = arith.mulf %11, %11 : vector<16x32xf32>
    %cst_14 = arith.constant dense<0.000000e+00> : vector<16xf32>
    %21 = vector.multi_reduction <add>, %20, %cst_14 [1] : vector<16x32xf32> to vector<16xf32>
    %22 = vector.shape_cast %21 : vector<16xf32> to vector<16x1xf32>
    %cst_15 = arith.constant 9.99999996E-13 : f32
    %23 = vector.broadcast %cst_15 : f32 to vector<16x1xf32>
    %24 = arith.addf %22, %23 : vector<16x1xf32>
    %25 = math.rsqrt %24 : vector<16x1xf32>
    %26 = vector.broadcast %25 : vector<16x1xf32> to vector<16x32xf32>
    %27 = arith.mulf %11, %26 : vector<16x32xf32>
    %cst_16 = arith.constant dense<0.000000e+00> : vector<16x256xf32>
    %28 = tpu.matmul %27, %19, %cst_16 {dimension_numbers = #tpu.dot_dimension_numbers<[1], [0], [0], [1], [0, 0, 1, 1], [], []>} : vector<16x32xf32>, vector<32x256xf32>, vector<16x256xf32> -> vector<16x256xf32>
    %29 = vector.extract_strided_slice %28 {offsets = [0, 0], sizes = [8, 128], strides = [1, 1]} : vector<16x256xf32> to vector<8x128xf32>
    %cst_17 = arith.constant 0.000000e+00 : f32
    %30 = vector.broadcast %cst_17 : f32 to vector<8x128xf32>
    %31 = arith.maximumf %29, %30 : vector<8x128xf32>
    %cst_18 = arith.constant dense<0.000000e+00> : vector<128xf32>
    %32 = vector.multi_reduction <add>, %31, %cst_18 [0] : vector<8x128xf32> to vector<128xf32>
    %33 = vector.shape_cast %32 : vector<128xf32> to vector<1x128xf32>
    %cst_19 = arith.constant 1.250000e-01 : f32
    %34 = vector.broadcast %cst_19 : f32 to vector<1x128xf32>
    %35 = arith.mulf %33, %34 : vector<1x128xf32>
    %c0_20 = arith.constant 0 : index
    %c0_21 = arith.constant 0 : index
    %36 = vector.load %arg7[%c0_20, %c0_21] : memref<2x128xf32, #tpu.memory_space<vmem>>, vector<1x128xf32>
    tpu.vector_store %arg7[%c0_20, %c0_21], %35 {strides = array<i32>} : memref<2x128xf32, #tpu.memory_space<vmem>>, vector<1x128xf32>,
    %37 = vector.extract_strided_slice %28 {offsets = [8, 128], sizes = [8, 128], strides = [1, 1]} : vector<16x256xf32> to vector<8x128xf32>
    %cst_22 = arith.constant 0.000000e+00 : f32
    %38 = vector.broadcast %cst_22 : f32 to vector<8x128xf32>
    %39 = arith.maximumf %37, %38 : vector<8x128xf32>
    %cst_23 = arith.constant dense<0.000000e+00> : vector<128xf32>
    %40 = vector.multi_reduction <add>, %39, %cst_23 [0] : vector<8x128xf32> to vector<128xf32>
    %41 = vector.shape_cast %40 : vector<128xf32> to vector<1x128xf32>
    %cst_24 = arith.constant 1.250000e-01 : f32
    %42 = vector.broadcast %cst_24 : f32 to vector<1x128xf32>
    %43 = arith.mulf %41, %42 : vector<1x128xf32>
    %c1 = arith.constant 1 : index
    %c0_25 = arith.constant 0 : index
    %44 = vector.load %arg7[%c1, %c0_25] : memref<2x128xf32, #tpu.memory_space<vmem>>, vector<1x128xf32>
    tpu.vector_store %arg7[%c1, %c0_25], %43 {strides = array<i32>} : memref<2x128xf32, #tpu.memory_space<vmem>>, vector<1x128xf32>,
    return
  }
  func.func @transform_0(%arg0: i32) -> (i32, i32) {
    %c0_i32 = arith.constant 0 : i32
    %c0_i32_0 = arith.constant 0 : i32
    %c0_i32_1 = arith.constant 0 : i32
    return %c0_i32, %c0_i32_0 : i32, i32
  }
  func.func @transform_1(%arg0: i32) -> (i32, i32) {
    %c0_i32 = arith.constant 0 : i32
    %c0_i32_0 = arith.constant 0 : i32
    %c0_i32_1 = arith.constant 0 : i32
    return %c0_i32, %c0_i32_0 : i32, i32
  }
  func.func @transform_2(%arg0: i32) -> (i32, i32) {
    %c0_i32 = arith.constant 0 : i32
    %c0_i32_0 = arith.constant 0 : i32
    %c0_i32_1 = arith.constant 0 : i32
    return %c0_i32, %c0_i32_0 : i32, i32
  }
  func.func @transform_3(%arg0: i32) -> (i32, i32) {
    %c0_i32 = arith.constant 0 : i32
    %c0_i32_0 = arith.constant 0 : i32
    %c0_i32_1 = arith.constant 0 : i32
    return %c0_i32, %c0_i32_0 : i32, i32
  }
  func.func @transform_4(%arg0: i32) -> (i32, i32) {
    %c0_i32 = arith.constant 0 : i32
    %c0_i32_0 = arith.constant 0 : i32
    %c0_i32_1 = arith.constant 0 : i32
    return %c0_i32, %c0_i32_0 : i32, i32
  }
  func.func @transform_5(%arg0: i32) -> (i32, i32) {
    %c0_i32 = arith.constant 0 : i32
    %c0_i32_0 = arith.constant 0 : i32
    %c0_i32_1 = arith.constant 0 : i32
    return %c0_i32, %c0_i32_0 : i32, i32
  }
  func.func @transform_6(%arg0: i32) -> (i32, i32) {
    %c0_i32 = arith.constant 0 : i32
    %c0_i32_0 = arith.constant 0 : i32
    %c0_i32_1 = arith.constant 0 : i32
    return %c0_i32, %c0_i32_0 : i32, i32
  }
}

</mosaic_0001>

<bundles_post_ra>
// kernel: tpu_custom_call.1
= control target key start
LH: loop header
LB: loop body
LE: loop exit
PB: predicated region body
PF: predicated region fallthrough
CT: control target
= control target key end

     0   :  { %vm84_vm0 = vcmask 261120   ;;  %v674_v10 = vmov 0   ;;  %s919_s0 = inlined_call_operand.vmem [shape: f32[256,32], index: 0, kind: input, shape index: {}]   ;;  %s920_s1 = inlined_call_operand.vmem [shape: f32[16,32], index: 1, kind: input, shape index: {}]   ;;  %s921_s2 = inlined_call_operand.vmem [shape: f32[32,32], index: 2, kind: input, shape index: {}]   ;;  %s922_s3 = inlined_call_operand.vmem [shape: f32[32,1], index: 3, kind: input, shape index: {}]   ;;  %s923_s4 = inlined_call_operand.vmem [shape: f32[32,32], index: 4, kind: input, shape index: {}]   ;;  %s924_s5 = inlined_call_operand.vmem [shape: f32[1,32], index: 5, kind: input, shape index: {}]   ;;  %s925_s6 = inlined_call_operand.hbm [shape: f32[2,128], index: 6, kind: output, shape index: {}]  }
   0x1   :  { %v59_v0 = vld [vmem:[%s919_s0 + $0xf8] sm:$0xff]  ;;  %v286_v3 = vld [vmem:[%s923_s4 + $0x10] sm:$0xff]  ;;  %v285_v5 = vld [vmem:[%s923_s4 + $0x8] sm:$0xff]  ;;  %642 = vset.pattern.permute.xlu0 %v674_v10  ;;  %643 = vset.pattern.permute.xlu1 %v674_v10 }
   0x2   :  { %v287_v1 = vld [vmem:[%s923_s4 + $0x18] sm:$0xff]  ;;  %582 = vmatprep.subr.msk.mxu0 %vm84_vm0, %v59_v0  ;;  %v58_v4 = vld [vmem:[%s919_s0 + $0xf0] sm:$0xff]  ;;  %v282_v6 = vld [vmem:[%s920_s1] sm:$0xff] }
   0x3   :  { %v43_v2 = vld [vmem:[%s919_s0 + $0x78] sm:$0xff]  ;;  %628 = vmatprep.subr.mxu1 %v287_v1  ;;  %v42_v7 = vld [vmem:[%s919_s0 + $0x70] sm:$0xff]  ;;  %v284_v8 = vld [vmem:[%s923_s4] sm:$0xff]  ;;  %636 = vmatprep.mubr.msk.f32.mxu1 %vm84_vm0, %v282_v6 }
   0x4   :  { %583 = vmatpush3.xpose.msk.msra.mxu0 %vm84_vm0, %v43_v2  ;;  %629 = vmatpush3.msra.mxu1 %v287_v1  ;;  %v57_v9 = vld [vmem:[%s919_s0 + $0xe8] sm:$0xff]  ;;  %v56_v13 = vld [vmem:[%s919_s0 + $0xe0] sm:$0xff]  ;;  %v55_v15 = vld [vmem:[%s919_s0 + $0xd8] sm:$0xff] }
   0x5   :  { %630 = vmatprep.subr.mxu1 %v286_v3  ;;  %584 = vmatprep.subr.msk.mxu0 %vm84_vm0, %v58_v4  ;;  %v283_v11 = vld [vmem:[%s920_s1 + $0x8] sm:$0xff]  ;;  %v40_v14 = vld [vmem:[%s919_s0 + $0x60] sm:$0xff]  ;;  %v62_v18 = vld [vmem:[%s922_s3 + $0x10] sm:$0xff] }
   0x6   :  { %631 = vmatpush3.msra.mxu1 %v286_v3  ;;  %v41_v12 = vld [vmem:[%s919_s0 + $0x68] sm:$0xff]  ;;  %v24_v16 = vld [vmem:[%s921_s2] sm:$0xff]  ;;  %v39_v19 = vld [vmem:[%s919_s0 + $0x58] sm:$0xff] }
   0x7   :  { %632 = vmatprep.subr.mxu1 %v285_v5  ;;  %614 = vmatprep.mubr.msk.f32.mxu0 %vm84_vm0, %v24_v16  ;;  %v60_v17 = vld [vmem:[%s922_s3] sm:$0xff] }
   0x8   :  { %585 = vmatpush3.xpose.msk.msra.mxu0 %vm84_vm0, %v42_v7  ;;  %633 = vmatpush3.msra.mxu1 %v285_v5 }
   0x9   :  { %634 = vmatprep.subr.mxu1 %v284_v8  ;;  %586 = vmatprep.subr.msk.mxu0 %vm84_vm0, %v57_v9 }
   0xa   :  { %635 = vmatpush3.msra.mxu1 %v284_v8  ;;  %66 = vperm.xlu0 %642, %v60_v17  }
   0xb   :  { %637 = vmatmul.mubr.msk.f32.vlgmr.msra.gmra.mxu1 %vm84_vm0, %v283_v11 }
   0xc   :  { %587 = vmatpush3.xpose.msk.msra.mxu0 %vm84_vm0, %v41_v12 }
   0xd   :  { %588 = vmatprep.subr.msk.mxu0 %vm84_vm0, %v56_v13 }
  0x10   :  { %589 = vmatpush3.xpose.msk.msra.mxu0 %vm84_vm0, %v40_v14 }
  0x11   :  { %590 = vmatprep.subr.msk.mxu0 %vm84_vm0, %v55_v15 }
  0x12   :  { %11 = vsyncpa [#allocation3], 0  ;;  %v54_v20 = vld [vmem:[%s919_s0 + $0xd0] sm:$0xff]  ;;  %76 = vperm.xlu1 %643, %v62_v18   ;;  %v61_v21 = vld [vmem:[%s922_s3 + $0x8] sm:$0xff]  ;;  %v675_v56 = vmov 0.0  }
  0x13   :  { %v63_v22 = vld [vmem:[%s922_s3 + $0x18] sm:$0xff]  ;;  %v38_v23 = vld [vmem:[%s919_s0 + $0x50] sm:$0xff]  ;;  %71 = vperm.xlu0 %642, %v61_v21   ;;  %v53_v24 = vld [vmem:[%s919_s0 + $0xc8] sm:$0xff]  ;;  %498 = vmatprep.mubr.f32.mxu1 %v675_v56 }
  0x14   :  { %591 = vmatpush3.xpose.msk.msra.mxu0 %vm84_vm0, %v39_v19  ;;  %v37_v25 = vld [vmem:[%s919_s0 + $0x48] sm:$0xff]  ;;  %v52_v26 = vld [vmem:[%s919_s0 + $0xc0] sm:$0xff]  ;;  %v51_v28 = vld [vmem:[%s919_s0 + $0xb8] sm:$0xff] }
  0x15   :  { %592 = vmatprep.subr.msk.mxu0 %vm84_vm0, %v54_v20  ;;  %v36_v27 = vld [vmem:[%s919_s0 + $0x40] sm:$0xff]  ;;  %v35_v29 = vld [vmem:[%s919_s0 + $0x38] sm:$0xff]  ;;  %v50_v30 = vld [vmem:[%s919_s0 + $0xb0] sm:$0xff] }
  0x16   :  { %81 = vperm.xlu1 %643, %v63_v22   ;;  %v34_v31 = vld [vmem:[%s919_s0 + $0x30] sm:$0xff]  ;;  %v49_v32 = vld [vmem:[%s919_s0 + $0xa8] sm:$0xff]  ;;  %v48_v34 = vld [vmem:[%s919_s0 + $0xa0] sm:$0xff] }
  0x17   :  { %v33_v33 = vld [vmem:[%s919_s0 + $0x28] sm:$0xff]  ;;  %v32_v35 = vld [vmem:[%s919_s0 + $0x20] sm:$0xff]  ;;  %v47_v36 = vld [vmem:[%s919_s0 + $0x98] sm:$0xff] }
  0x18   :  { %593 = vmatpush3.xpose.msk.msra.mxu0 %vm84_vm0, %v38_v23  ;;  %v31_v37 = vld [vmem:[%s919_s0 + $0x18] sm:$0xff]  ;;  %v46_v38 = vld [vmem:[%s919_s0 + $0x90] sm:$0xff]  ;;  %v45_v40 = vld [vmem:[%s919_s0 + $0x88] sm:$0xff] }
  0x19   :  { %594 = vmatprep.subr.msk.mxu0 %vm84_vm0, %v53_v24  ;;  %v30_v39 = vld [vmem:[%s919_s0 + $0x10] sm:$0xff]  ;;  %v29_v41 = vld [vmem:[%s919_s0 + $0x8] sm:$0xff]  ;;  %v44_v42 = vld [vmem:[%s919_s0 + $0x80] sm:$0xff] }
  0x1a   :  { %v28_v43 = vld [vmem:[%s919_s0] sm:$0xff]  ;;  %v25_v44 = vld [vmem:[%s921_s2 + $0x8] sm:$0xff]  ;;  %v26_v45 = vld [vmem:[%s921_s2 + $0x10] sm:$0xff] }
  0x1b   :  { %v27_v46 = vld [vmem:[%s921_s2 + $0x18] sm:$0xff]  ;;  %v577_v47 = vld [vmem:[%s924_s5] ss:$0 sm:$0xff]  ;;  %s676_s2 = smov [#allocation2]  }
  0x1c   :  { %595 = vmatpush3.xpose.msk.msra.mxu0 %vm84_vm0, %v37_v25  ;;  %s533_s5 = sshll.u32 %s676_s2, 4  ;;  %s534_s5 = int_to_ptr.vmem [resolvable:$true] %s533_s5 }
  0x1d   :  { %596 = vmatprep.subr.msk.mxu0 %vm84_vm0, %v52_v26  ;;  %s652_s10 = scalar_lea.vmem %s534_s5, 32  ;;  %p657_p1 = scmp.lt.s32.totalorder %s534_s5, %s534_s5 }
  0x1e   :  { %p653_p0 = scmp.ne.s32.totalorder %s534_s5, %s652_s10  ;;  %p658_p2 = scmp.lt.s32.totalorder %s652_s10, %s652_s10 }
  0x20   :  { %597 = vmatpush3.xpose.msk.msra.mxu0 %vm84_vm0, %v36_v27  ;;  %p659_p3 = por %p658_p2, %p657_p1 }
  0x21   :  { %598 = vmatprep.subr.msk.mxu0 %vm84_vm0, %v51_v28 }
  0x22   :  { %p660_p4 = pnand %p659_p3, %p653_p0 }
  0x24   :  { %599 = vmatpush3.xpose.msk.msra.mxu0 %vm84_vm0, %v35_v29 }
  0x25   :  { %600 = vmatprep.subr.msk.mxu0 %vm84_vm0, %v50_v30 }
  0x28   :  { %601 = vmatpush3.xpose.msk.msra.mxu0 %vm84_vm0, %v34_v31 }
  0x29   :  { %602 = vmatprep.subr.msk.mxu0 %vm84_vm0, %v49_v32 }
  0x2c   :  { %603 = vmatpush3.xpose.msk.msra.mxu0 %vm84_vm0, %v33_v33 }
  0x2d   :  { %604 = vmatprep.subr.msk.mxu0 %vm84_vm0, %v48_v34 }
  0x30   :  { %605 = vmatpush3.xpose.msk.msra.mxu0 %vm84_vm0, %v32_v35 }
  0x31   :  { %606 = vmatprep.subr.msk.mxu0 %vm84_vm0, %v47_v36 }
  0x34   :  { %607 = vmatpush3.xpose.msk.msra.mxu0 %vm84_vm0, %v31_v37 }
  0x35   :  { %608 = vmatprep.subr.msk.mxu0 %vm84_vm0, %v46_v38 }
  0x38   :  { %609 = vmatpush3.xpose.msk.msra.mxu0 %vm84_vm0, %v30_v39 }
  0x39   :  { %610 = vmatprep.subr.msk.mxu0 %vm84_vm0, %v45_v40 }
  0x3c   :  { %611 = vmatpush3.xpose.msk.msra.mxu0 %vm84_vm0, %v29_v41 }
  0x3d   :  { %612 = vmatprep.subr.msk.mxu0 %vm84_vm0, %v44_v42 }
  0x40   :  { %613 = vmatpush3.xpose.msk.msra.mxu0 %vm84_vm0, %v28_v43 }
  0x43   :  { %615 = vmatmul.mubr.msk.f32.vlgmr.msra.gmra.mxu0 %vm84_vm0, %v24_v16 }
  0x44   :  { %616 = vmatprep.mubr.msk.f32.mxu0 %vm84_vm0, %v25_v44 }
  0x47   :  { %617 = vmatmul.mubr.msk.f32.gmra.mxu0 %vm84_vm0, %v25_v44 }
  0x48   :  { %618 = vmatprep.mubr.msk.f32.mxu0 %vm84_vm0, %v26_v45 }
  0x4b   :  { %619 = vmatmul.mubr.msk.f32.gmra.mxu0 %vm84_vm0, %v26_v45 }
  0x4c   :  { %620 = vmatprep.mubr.msk.f32.mxu0 %vm84_vm0, %v27_v46 }
  0x4f   :  { %621 = vmatmul.mubr.msk.f32.gmra.mxu0 %vm84_vm0, %v27_v46 }
  0x85   :  { %v67_v57 = vpop.permute.xlu0 %66 }
  0x8d   :  { %v77_v0 = vpop.permute.xlu1 %76 }
  0x8e   :  { %v72_v61 = vpop.permute.xlu0 %71 }
  0x91   :  { %v82_v12 = vpop.permute.xlu1 %81 }
  0xcb   :  { %v638_v48 = vpop.f32.mrf.mxu1 }
  0xcc   :  { %v895_v49 = vadd.f32 %v638_v48, %v577_v47 }
  0xcd   :  { %v367_v50 = vpop.f32.mrf.mxu1 }
  0xce   :  { %v897_v51 = vadd.f32 %v577_v47, %v367_v50  ;;  %v415_v52 = vmul.f32 %v895_v49, %v895_v49 }
  0xd0   :  { %v419_v53 = vsel %vm84_vm0, %v415_v52, 0.0  ;;  %v414_v54 = vmul.f32 %v897_v51, %v897_v51 }
  0xd1   :  { %420 = vadd.xlane.f32.xlu1 %v419_v53 }
  0xd2   :  { %v416_v55 = vsel %vm84_vm0, %v414_v54, 0.0 }
  0xd3   :  { %417 = vadd.xlane.f32.xlu0 %v416_v55 }
 0x103   :  { %v259_v58 = vpop.f32.mrf.mxu0 }
 0x104   :  { %v906_v59 = vadd.f32 %v259_v58, %v67_v57 }
 0x105   :  { %v261_v60 = vpop.f32.mrf.mxu0 }
 0x106   :  { %v262_v62 = vadd.f32 %v261_v60, %v67_v57  ;;  %v376_v1 = vmul.f32 %v906_v59, %v906_v59 }
 0x107   :  { %v265_v63 = vpop.f32.mrf.mxu0 }
 0x108   :  { %v266_v2 = vadd.f32 %v265_v63, %v72_v61  ;;  %v377_v4 = vmul.f32 %v262_v62, %v262_v62 }
 0x109   :  { %v267_v3 = vpop.f32.mrf.mxu0 }
 0x10a   :  { %v268_v5 = vadd.f32 %v267_v3, %v72_v61  ;;  %v378_v6 = vmul.f32 %v266_v2, %v266_v2 }
 0x10b   :  { %v271_v7 = vpop.f32.mrf.mxu0 }
 0x10c   :  { %v379_v8 = vmul.f32 %v268_v5, %v268_v5  ;;  %v384_v9 = vadd.f32 %v378_v6, %v376_v1  ;;  %v272_v10 = vadd.f32 %v271_v7, %v77_v0 }
 0x10d   :  { %v273_v11 = vpop.f32.mrf.mxu0 }
 0x10e   :  { %v393_v13 = vadd.f32 %v379_v8, %v377_v4  ;;  %v380_v14 = vmul.f32 %v272_v10, %v272_v10  ;;  %v274_v15 = vadd.f32 %v273_v11, %v77_v0 }
 0x10f   :  { %v277_v16 = vpop.f32.mrf.mxu0 }
 0x110   :  { %v385_v17 = vadd.f32 %v384_v9, %v380_v14  ;;  %v381_v18 = vmul.f32 %v274_v15, %v274_v15  ;;  %v278_v19 = vadd.f32 %v277_v16, %v82_v12 }
 0x111   :  { %v279_v20 = vpop.f32.mrf.mxu0 }
 0x112   :  { %v394_v21 = vadd.f32 %v393_v13, %v381_v18  ;;  %v382_v22 = vmul.f32 %v278_v19, %v278_v19  ;;  %v280_v23 = vadd.f32 %v279_v20, %v82_v12 }
 0x114   :  { %v386_v24 = vadd.f32 %v385_v17, %v382_v22  ;;  %v383_v25 = vmul.f32 %v280_v23, %v280_v23 }
 0x116   :  { %v387_v26 = vrot.slane %v386_v24, 4  ;;  %v395_v27 = vadd.f32 %v394_v21, %v383_v25 }
 0x118   :  { %v388_v28 = vadd.f32 %v387_v26, %v386_v24  ;;  %v396_v29 = vrot.slane %v395_v27, 4 }
 0x11a   :  { %v389_v30 = vrot.slane %v388_v28, 2  ;;  %v397_v31 = vadd.f32 %v396_v29, %v395_v27 }
 0x11c   :  { %v390_v32 = vadd.f32 %v389_v30, %v388_v28  ;;  %v398_v33 = vrot.slane %v397_v31, 2 }
 0x11e   :  { %v391_v34 = vrot.slane %v390_v32, 1  ;;  %v399_v35 = vadd.f32 %v398_v33, %v397_v31 }
 0x120   :  { %v392_v36 = vadd.f32 %v391_v34, %v390_v32  ;;  %v400_v37 = vrot.slane %v399_v35, 1 }
 0x122   :  { %v402_v38 = vadd.f32 1e-12, %v392_v36  ;;  %v401_v39 = vadd.f32 %v400_v37, %v399_v35 }
 0x124   :  { %v403_v40 = vadd.f32 1e-12, %v401_v39  ;;  %644 = vrsqrt.f32 %v402_v38 }
 0x126   :  { %646 = vrsqrt.f32 %v403_v40 }
 0x131   :  { %v645_v41 = vpop.eup %644 }
 0x132   :  { %v412_v44 = vmul.f32 %v645_v41, %v278_v19  ;;  %v410_v46 = vmul.f32 %v645_v41, %v272_v10  ;;  %v408_v48 = vmul.f32 %v645_v41, %v266_v2  ;;  %v406_v52 = vmul.f32 %v645_v41, %v906_v59 }
 0x133   :  { %v647_v42 = vpop.eup %646 }
 0x134   :  { %v413_v43 = vmul.f32 %v647_v42, %v280_v23  ;;  %v411_v45 = vmul.f32 %v647_v42, %v274_v15  ;;  %v409_v47 = vmul.f32 %v647_v42, %v268_v5  ;;  %v407_v50 = vmul.f32 %v647_v42, %v262_v62 }
 0x136   :  { %458 = vmatprep.subr.mxu1 %v413_v43 }
 0x137   :  { %459 = vmatpush1.msra.mxu1 %v412_v44 }
 0x138   :  { %460 = vmatprep.subr.mxu1 %v411_v45 }
 0x139   :  { %461 = vmatpush1.msra.mxu1 %v410_v46 }
 0x13a   :  { %462 = vmatprep.subr.mxu1 %v409_v47 }
 0x13b   :  { %463 = vmatpush1.msra.mxu1 %v408_v48 }
 0x13c   :  { %464 = vmatprep.subr.mxu1 %v407_v50 }
 0x13d   :  { %465 = vmatpush1.msra.mxu1 %v406_v52 }
 0x15a   :  { %v421_v53 = vpop.xlane.xlu1 %420 }
 0x15b   :  { %v423_v55 = vadd.f32 1e-12, %v421_v53 }
 0x15c   :  { %v418_v54 = vpop.xlane.xlu0 %417 }
 0x15d   :  { %v422_v57 = vadd.f32 1e-12, %v418_v54 }
 0x15f   :  { %648 = vrsqrt.f32 %v422_v57 }
 0x160   :  { %650 = vrsqrt.f32 %v423_v55 }
 0x16c   :  { %v649_v58 = vpop.eup %648 }
 0x16d   :  { %v426_v60 = vmul.f32 %v649_v58, %v897_v51  ;;  %v651_v61 = vpop.eup %650 }
 0x16e   :  { %v427_v62 = vmul.f32 %v651_v61, %v895_v49 }
 0x16f   :  { %580 = vmatmul.mubr.msk.f32.vlgmr.msra.gmra.mxu1 %vm84_vm0, %v426_v60 }
 0x170   :  { %503 = vmatprep.mubr.f32.mxu1 %v675_v56 }
 0x173   :  { %581 = vmatmul.mubr.msk.f32.gmra.mxu1 %vm84_vm0, %v427_v62 }
 0x22f   :  { %v500_v59 = vpop.f32.mrf.mxu1 }
 0x230   :  { %v509_v63 = vmax.f32 %v500_v59, 0.0 }
 0x231   :  { %v502_v0 = vpop.f32.mrf.mxu1 }
 0x232   :  { %v510_v1 = vrot.slane %v509_v63, 4 }
 0x233   :  { %v505_v2 = vpop.f32.mrf.mxu1 }
 0x234   :  { %v511_v3 = vadd.f32 %v510_v1, %v509_v63 }
 0x235   :  { %v506_v4 = vpop.f32.mrf.mxu1 }
 0x236   :  { %v512_v5 = vrot.slane %v511_v3, 2  ;;  %v518_v6 = vmax.f32 %v506_v4, 0.0 }
 0x238   :  { %v513_v7 = vadd.f32 %v512_v5, %v511_v3  ;;  %v519_v51 = vrot.slane %v518_v6, 4 }
 0x23a   :  { %v520_v8 = vadd.f32 %v519_v51, %v518_v6  ;;  %v514_v9 = vrot.slane %v513_v7, 1 }
 0x23c   :  { %v521_v10 = vrot.slane %v520_v8, 2  ;;  %v515_v11 = vadd.f32 %v514_v9, %v513_v7 }
 0x23e   :  { %v522_v56 = vadd.f32 %v521_v10, %v520_v8  ;;  %v516_v12 = vmul.f32 0.125, %v515_v11 }
 0x240   :  { %v523_v49 = vrot.slane %v522_v56, 1  ;;  %517 = vst [vmem:[#allocation2] sm:$0x1] %v516_v12 }
 0x242   :  { %v524_v13 = vadd.f32 %v523_v49, %v522_v56 }
 0x244   :  { %v525_v14 = vmul.f32 0.125, %v524_v13 }
 0x246   :  { %526 = vst [vmem:[#allocation2 + $0x1] sm:$0x1] %v525_v14 }
 0x247   :  { %663 = shalt.err (!%p660_p4)
}
 0x248   :  { %536 = dma.vmem_to_hbm [thread:$0]  %s534_s5, 32, %s925_s6, [#allocation3]  }
 0x249   :  { %672 = dma.done.wait [#allocation3], 32  }
 0x24a   :  { %673 = vsyncadd [#allocation3], 4294967264 }
 0x24b   :  { %540 = vsyncpa [#allocation3], 1 }

</bundles_post_ra>
